<compile_context>
chip_gen: v6e
topology: v6e:2x2x1
jax: 0.10.0
libtpu: 0.0.40
codegen_flags: <defaults>
</compile_context>

<pallas_src>
import jax
import jax.numpy as jnp
from jax import lax
from jax.experimental import pallas as pl
from jax.experimental.pallas import tpu as pltpu

LANES = 128          # vreg lane width; last dim of every slab/block
SUBLANES = 8         # f32 vreg sublane count; row-alignment unit
CHUNK_ROWS = 1024    # in-kernel compute sub-chunk (bounds VMEM temporaries)


def _round_up(a: int, b: int) -> int:
    return (a + b - 1) // b * b


def _tpu_flavor():
    """(per-block byte budget, tensorcores to split over, use fast reciprocal)."""
    kind = ""
    try:
        dev = jax.devices()[0]
        if dev.platform == "tpu":
            kind = dev.device_kind.lower().replace(" ", "")
    except Exception:  # defensive; default below is safe everywhere
        pass
    if "v7" in kind or "tpu7" in kind:
        # v7x: 2 TCs/chip, ~3.2 TB/s HBM, 32 MiB default scoped VMEM per TC.
        return 4 * 1024 * 1024, 2, True
    if "v6" in kind:
        # v6e: 1 TC, 32 MiB default scoped VMEM.
        return 4 * 1024 * 1024, 1, False
    # v5e and older / unknown: 16 MiB default scoped VMEM -> smaller blocks.
    return 2 * 1024 * 1024, 1, False


def _make_kernel(*, tile_rows, chunk_rows, steps, nrows, needs_mask, use_fast_recip):
    n_chunks = tile_rows // chunk_rows

    def _accum_chunk(x_ref, t_ref, o_ref, start, mask_row0):
        x = x_ref[pl.ds(start, chunk_rows), :].astype(jnp.float32)
        t = t_ref[pl.ds(start, chunk_rows), :].astype(jnp.float32)
        if mask_row0 is not None:
            rid = mask_row0 + start + lax.broadcasted_iota(
                jnp.int32, (chunk_rows, LANES), 0)
            valid = rid < nrows
            x = jnp.where(valid, x, 1.0)   # (1-1)^2 / 1 == 0 for masked rows
            t = jnp.where(valid, t, 1.0)
        d = x - t
        if use_fast_recip:
            # EUP reciprocal + one Newton-Raphson step (~f32 accurate).  Keeps the
            # VALU slot free on v7x, where 3.2 TB/s HBM makes VALU the binding unit.
            r = pl.reciprocal(t, approx=True)
            r = r * (2.0 - t * r)
            v = d * d * r
        else:
            v = (d * d) / t
        # Fold rows into (chunk_rows/8, 8, 128) and reduce axis 0: pure VPU adds.
        o_ref[...] = o_ref[...] + jnp.sum(v.reshape(-1, SUBLANES, LANES), axis=0)

    def kernel(x_ref, t_ref, o_ref):
        i = pl.program_id(1)

        @pl.when(i == 0)
        def _():
            o_ref[...] = jnp.zeros_like(o_ref)

        def run(mask_row0):
            if n_chunks == 1:
                _accum_chunk(x_ref, t_ref, o_ref, 0, mask_row0)
            else:
                @pl.loop(0, n_chunks)
                def _(k):
                    start = pl.multiple_of(k * chunk_rows, SUBLANES)
                    _accum_chunk(x_ref, t_ref, o_ref, start, mask_row0)

        if needs_mask:
            # Global first row covered by this (unclamped) block slot.
            row0 = (pl.program_id(0) * steps + i) * tile_rows

            @pl.when(row0 + tile_rows <= nrows)   # fully in-range block: fast path
            def _():
                run(None)

            @pl.when(row0 + tile_rows > nrows)    # boundary / excess block: mask rows
            def _():
                run(row0)
        else:
            run(None)

    return kernel


def square_relative(input_arr, target_arr):
    """Pallas equivalent of squareRelative.forward: sum((input - target)**2 / target)."""
    assert input_arr.shape == target_arr.shape, "input/target shapes must match"

    x = jnp.ravel(input_arr)          # reshape of a contiguous array: no copy
    t = jnp.ravel(target_arr)
    n = x.shape[0]

    out_dtype = jnp.result_type(x.dtype, t.dtype)
    if not jnp.issubdtype(out_dtype, jnp.floating):
        out_dtype = jnp.float32

    # Tiny inputs: the pallas_call launch would dominate; plain jnp is faster.
    if n < SUBLANES * LANES:
        xf = x.astype(jnp.float32)
        tf = t.astype(jnp.float32)
        return jnp.sum((xf - tf) * (xf - tf) / tf).astype(out_dtype)

    budget_bytes, max_cores, use_fast_recip = _tpu_flavor()
    itemsize = max(jnp.dtype(x.dtype).itemsize, jnp.dtype(t.dtype).itemsize)

    # Only pad up to the next 128-lane multiple (<= 127 elements, and only when
    # n % 128 != 0).  Pad value 1 contributes (1-1)^2/1 == 0.  Block-boundary
    # tails are masked in-kernel, so no chunk-sized padding / full copies.
    # TODO(synk): a manual-DMA (memory_space=pl.ANY) path over the flat array
    # would avoid even this copy for lane-unaligned n.
    pad = (-n) % LANES
    if pad:
        x = jnp.pad(x, (0, pad), constant_values=1)
        t = jnp.pad(t, (0, pad), constant_values=1)
    rows = (n + pad) // LANES

    num_splits = max_cores
    max_tile_rows = max(SUBLANES, budget_bytes // (LANES * itemsize))
    tile_rows = min(
        max_tile_rows,
        _round_up(pl.cdiv(rows, num_splits), SUBLANES),
        max(SUBLANES, rows // SUBLANES * SUBLANES),
    )
    if tile_rows > CHUNK_ROWS:
        tile_rows = tile_rows // CHUNK_ROWS * CHUNK_ROWS
        chunk_rows = CHUNK_ROWS
    else:
        chunk_rows = tile_rows

    num_blocks = pl.cdiv(rows, tile_rows)
    num_splits = min(num_splits, num_blocks)
    steps = pl.cdiv(num_blocks, num_splits)
    needs_mask = (num_splits * steps * tile_rows) != rows
    last_block = num_blocks - 1

    x2 = x.reshape(rows, LANES)       # bitcast reshape, no copy
    t2 = t.reshape(rows, LANES)

    def in_map(c, i):
        # Clamp excess trailing block slots onto the last real block; their
        # contribution is zeroed by the in-kernel row mask.
        return (jnp.minimum(c * steps + i, last_block), 0)

    kernel = _make_kernel(
        tile_rows=tile_rows, chunk_rows=chunk_rows, steps=steps, nrows=rows,
        needs_mask=needs_mask, use_fast_recip=use_fast_recip,
    )

    lead_sem = pltpu.CORE_PARALLEL if num_splits > 1 else pltpu.ARBITRARY

    out = pl.pallas_call(
        kernel,
        out_shape=jax.ShapeDtypeStruct((num_splits * SUBLANES, LANES), jnp.float32),
        grid_spec=pltpu.PrefetchScalarGridSpec(
            num_scalar_prefetch=0,
            grid=(num_splits, steps),
            in_specs=[
                pl.BlockSpec((tile_rows, LANES), in_map),
                pl.BlockSpec((tile_rows, LANES), in_map),
            ],
            out_specs=pl.BlockSpec((SUBLANES, LANES), lambda c, i: (c, 0)),
        ),
        compiler_params=pltpu.CompilerParams(
            dimension_semantics=(lead_sem, pltpu.ARBITRARY),
        ),
        cost_estimate=pl.CostEstimate(
            flops=5 * rows * LANES,
            transcendentals=0,
            bytes_accessed=rows * LANES
            * (jnp.dtype(x.dtype).itemsize + jnp.dtype(t.dtype).itemsize)
            + num_splits * SUBLANES * LANES * 4,
        ),
    )(x2, t2)

    # Combine the per-split (8,128) partial slabs -> scalar (matches torch.sum).
    return jnp.sum(out).astype(out_dtype)


if __name__ == "__main__":
    key = jax.random.PRNGKey(0)
    k1, k2, k3, k4 = jax.random.split(key, 4)

    # NCHW-style example; target kept positive/well-conditioned (loss divides by it).
    shape = (2, 4, 16, 16)
    inp = jax.random.normal(k1, shape, dtype=jnp.float32)
    tgt = jax.random.uniform(k2, shape, dtype=jnp.float32, minval=0.5, maxval=1.5)
    result = jax.block_until_ready(square_relative(inp, tgt))
    ref = jnp.sum(jnp.square(inp - tgt) / tgt)
    assert jnp.allclose(result, ref, rtol=1e-4, atol=1e-5), (result, ref)

    # Lane-unaligned size (3*5*7*11 = 1155) exercises the in-kernel tail masking.
    shape2 = (3, 5, 7, 11)
    inp2 = jax.random.normal(k3, shape2, dtype=jnp.float32)
    tgt2 = jax.random.uniform(k4, shape2, dtype=jnp.float32, minval=0.5, maxval=1.5)
    result2 = jax.block_until_ready(square_relative(inp2, tgt2))
    ref2 = jnp.sum(jnp.square(inp2 - tgt2) / tgt2)
    assert jnp.allclose(result2, ref2, rtol=1e-4, atol=1e-5), (result2, ref2)

    print("KERNEL_OK")
</pallas_src>

<mosaic_0001>
module attributes {stable_mosaic.version = 11 : i64} {
  func.func @kernel(%arg0: i32, %arg1: i32, %arg2: memref<16x128xf32, #tpu.memory_space<vmem>>, %arg3: memref<16x128xf32, #tpu.memory_space<vmem>>, %arg4: memref<8x128xf32, #tpu.memory_space<vmem>>) attributes {dimension_semantics = [#tpu.dimension_semantics<arbitrary>, #tpu.dimension_semantics<arbitrary>], iteration_bounds = array<i64: 1, 1>, scalar_prefetch = 0 : i64, scratch_operands = 0 : i64, tpu.core_type = #tpu.core_type<tc>, window_params = [{transform_indices = @transform_0, window_bounds = array<i64: 16, 128>}, {transform_indices = @transform_1, window_bounds = array<i64: 16, 128>}, {transform_indices = @transform_2, window_bounds = array<i64: 8, 128>}]} {
    %c0_i32 = arith.constant 0 : i32
    %0 = arith.cmpi eq, %arg1, %c0_i32 : i32
    %1 = arith.extui %0 : i1 to i32
    %c0_i32_0 = arith.constant 0 : i32
    %2 = arith.cmpi ne, %1, %c0_i32_0 : i32
    scf.if %2 {
      %cst_8 = arith.constant 0.000000e+00 : f32
      %13 = vector.broadcast %cst_8 : f32 to vector<8x128xf32>
      %c0_9 = arith.constant 0 : index
      %c0_10 = arith.constant 0 : index
      %14 = vector.load %arg4[%c0_9, %c0_10] : memref<8x128xf32, #tpu.memory_space<vmem>>, vector<8x128xf32>
      tpu.vector_store %arg4[%c0_9, %c0_10], %13 {strides = array<i32>} : memref<8x128xf32, #tpu.memory_space<vmem>>, vector<8x128xf32>,
    } else {
    }
    %c0 = arith.constant 0 : index
    %c0_1 = arith.constant 0 : index
    %3 = vector.load %arg2[%c0, %c0_1] : memref<16x128xf32, #tpu.memory_space<vmem>>, vector<16x128xf32>
    %c0_2 = arith.constant 0 : index
    %c0_3 = arith.constant 0 : index
    %4 = vector.load %arg3[%c0_2, %c0_3] : memref<16x128xf32, #tpu.memory_space<vmem>>, vector<16x128xf32>
    %5 = arith.subf %3, %4 : vector<16x128xf32>
    %6 = arith.mulf %5, %5 : vector<16x128xf32>
    %7 = arith.divf %6, %4 : vector<16x128xf32>
    %c0_4 = arith.constant 0 : index
    %c0_5 = arith.constant 0 : index
    %8 = vector.load %arg4[%c0_4, %c0_5] : memref<8x128xf32, #tpu.memory_space<vmem>>, vector<8x128xf32>
    %9 = vector.shape_cast %7 : vector<16x128xf32> to vector<2x8x128xf32>
    %cst = arith.constant dense<0.000000e+00> : vector<8x128xf32>
    %10 = vector.multi_reduction <add>, %9, %cst [0] : vector<2x8x128xf32> to vector<8x128xf32>
    %11 = arith.addf %8, %10 : vector<8x128xf32>
    %c0_6 = arith.constant 0 : index
    %c0_7 = arith.constant 0 : index
    %12 = vector.load %arg4[%c0_6, %c0_7] : memref<8x128xf32, #tpu.memory_space<vmem>>, vector<8x128xf32>
    tpu.vector_store %arg4[%c0_6, %c0_7], %11 {strides = array<i32>} : memref<8x128xf32, #tpu.memory_space<vmem>>, vector<8x128xf32>,
    return
  }
  func.func @transform_0(%arg0: i32, %arg1: i32) -> (i32, i32) {
    %c1_i32 = arith.constant 1 : i32
    %0 = arith.muli %arg0, %c1_i32 : i32
    %1 = arith.addi %0, %arg1 : i32
    %c0_i32 = arith.constant 0 : i32
    %2 = arith.minsi %1, %c0_i32 : i32
    %c0_i32_0 = arith.constant 0 : i32
    %c0_i32_1 = arith.constant 0 : i32
    return %2, %c0_i32_0 : i32, i32
  }
  func.func @transform_1(%arg0: i32, %arg1: i32) -> (i32, i32) {
    %c1_i32 = arith.constant 1 : i32
    %0 = arith.muli %arg0, %c1_i32 : i32
    %1 = arith.addi %0, %arg1 : i32
    %c0_i32 = arith.constant 0 : i32
    %2 = arith.minsi %1, %c0_i32 : i32
    %c0_i32_0 = arith.constant 0 : i32
    %c0_i32_1 = arith.constant 0 : i32
    return %2, %c0_i32_0 : i32, i32
  }
  func.func @transform_2(%arg0: i32, %arg1: i32) -> (i32, i32) {
    %c0_i32 = arith.constant 0 : i32
    %c0_i32_0 = arith.constant 0 : i32
    return %arg0, %c0_i32 : i32, i32
  }
}

</mosaic_0001>

<bundles_post_ra>
// kernel: tpu_custom_call.1
= control target key start
LH: loop header
LB: loop body
LE: loop exit
PB: predicated region body
PF: predicated region fallthrough
CT: control target
= control target key end

     0   :  { %7 = vsyncpa [#allocation3], 0  ;;  %s206_s0 = inlined_call_operand.hbm [shape: f32[16,128], index: 0, kind: input, shape index: {}]   ;;  %s207_s1 = inlined_call_operand.hbm [shape: f32[16,128], index: 1, kind: input, shape index: {}]   ;;  %s208_s2 = inlined_call_operand.hbm [shape: f32[8,128], index: 2, kind: output, shape index: {}]  }
   0x1   :  { %8 = vsyncpa [#allocation6], 0 }
   0x2   :  { %9 = vsyncpa [#allocation4], 0  ;;  %s177_s9 = smov [#allocation2]  }
   0x3   :  { %s21_s10 = sshll.u32 %s177_s9, 4  ;;  %s22_s10 = int_to_ptr.vmem [resolvable:$true] %s21_s10 }
   0x4   :  { %s119_s11 = scalar_lea.vmem %s22_s10, 256  ;;  %p124_p1 = scmp.lt.s32.totalorder %s22_s10, %s22_s10 }
   0x5   :  { %p120_p0 = scmp.ne.s32.totalorder %s22_s10, %s119_s11  ;;  %p125_p2 = scmp.lt.s32.totalorder %s119_s11, %s119_s11 }
   0x7   :  { %p126_p3 = por %p125_p2, %p124_p1 }
   0x9   :  { %p127_p4 = pnand %p126_p3, %p120_p0 }
   0xb   :  { %130 = shalt.err (!%p127_p4)
}
   0xc   :  { %s178_s12 = smov 128   ;;  %s179_s13 = smov 8  }
   0xd   :  { %27 = dma.hbm_to_vmem [thread:$0]  %s206_s0, 256, %s22_s10, [#allocation3], %s178_s12, %s178_s12, %s179_s13  }
   0xe   :  { %s180_s16 = smov [#allocation5]  }
   0xf   :  { %s39_s17 = sshll.u32 %s180_s16, 4  ;;  %s40_s17 = int_to_ptr.vmem [resolvable:$true] %s39_s17 }
  0x10   :  { %s139_s18 = scalar_lea.vmem %s40_s17, 256  ;;  %p144_p6 = scmp.lt.s32.totalorder %s40_s17, %s40_s17 }
  0x11   :  { %p140_p5 = scmp.ne.s32.totalorder %s40_s17, %s139_s18  ;;  %p145_p7 = scmp.lt.s32.totalorder %s139_s18, %s139_s18 }
  0x13   :  { %p146_p8 = por %p145_p7, %p144_p6 }
  0x15   :  { %p147_p9 = pnand %p146_p8, %p140_p5 }
  0x17   :  { %150 = shalt.err (!%p147_p9)
}
  0x18   :  { %45 = dma.hbm_to_vmem [thread:$0]  %s207_s1, 256, %s40_s17, [#allocation6], %s178_s12, %s178_s12, %s179_s13  }
  0x19   :  { %171 = dma.done.wait [#allocation3], 256  }
  0x1a   :  { %172 = vsyncadd [#allocation3], 4294967040 }
  0x1b   :  { %173 = dma.done.wait [#allocation6], 256  }
  0x1c   :  { %174 = vsyncadd [#allocation6], 4294967040  ;;  %v67_v0 = vld [vmem:[#allocation5] sm:$0xff]  ;;  %v68_v1 = vld [vmem:[#allocation5 + $0x8] sm:$0xff]  ;;  %s181_s0 = smov [#allocation7]  }
  0x1d   :  { %107 = vrcp.f32 %v67_v0  ;;  %v65_v2 = vld [vmem:[#allocation2] sm:$0xff]  ;;  %v66_v3 = vld [vmem:[#allocation2 + $0x8] sm:$0xff]  ;;  %s87_s1 = sshll.u32 %s181_s0, 4  ;;  %s88_s1 = int_to_ptr.vmem [resolvable:$true] %s87_s1 }
  0x1e   :  { %109 = vrcp.f32 %v68_v1  ;;  %v69_v4 = vsub.f32 %v65_v2, %v67_v0  ;;  %v70_v5 = vsub.f32 %v66_v3, %v68_v1  ;;  %s151_s21 = scalar_lea.vmem %s88_s1, 128  ;;  %p156_p11 = scmp.lt.s32.totalorder %s88_s1, %s88_s1 }
  0x1f   :  { %p152_p10 = scmp.ne.s32.totalorder %s88_s1, %s151_s21  ;;  %p157_p12 = scmp.lt.s32.totalorder %s151_s21, %s151_s21 }
  0x20   :  { %v71_v6 = vmul.f32 %v69_v4, %v69_v4  ;;  %v72_v7 = vmul.f32 %v70_v5, %v70_v5 }
  0x21   :  { %p158_p13 = por %p157_p12, %p156_p11 }
  0x23   :  { %p159_p0 = pnand %p158_p13, %p152_p10 }
  0x2a   :  { %v108_v8 = vpop.eup %107 }
  0x2b   :  { %v110_v9 = vpop.eup %109  ;;  %v74_v10 = vmul.f32 %v108_v8, %v71_v6 }
  0x2c   :  { %v76_v11 = vmul.f32 %v110_v9, %v72_v7 }
  0x2e   :  { %v78_v12 = vadd.f32 %v76_v11, %v74_v10 }
  0x30   :  { %80 = vst [vmem:[#allocation7] sm:$0xff] %v78_v12 }
  0x31   :  { %162 = shalt.err (!%p159_p0)
}
  0x32   :  { %90 = dma.vmem_to_hbm [thread:$0]  %s88_s1, 128, %s208_s2, [#allocation4]  }
  0x33   :  { %175 = dma.done.wait [#allocation4], 128  }
  0x34   :  { %176 = vsyncadd [#allocation4], 4294967168 }
  0x35   :  { %94 = vsyncpa [#allocation3], 1 }
  0x36   :  { %95 = vsyncpa [#allocation6], 1 }
  0x37   :  { %96 = vsyncpa [#allocation4], 1 }

</bundles_post_ra>
